<compile_context>
chip_gen: v6e
topology: v6e:2x2x1
jax: 0.10.0
libtpu: 0.0.40
codegen_flags: <defaults>
</compile_context>

<pallas_src>
import math

import jax
import jax.numpy as jnp
from jax.experimental import pallas as pl
from jax.experimental.pallas import tpu as pltpu

LANE = 128
SUBLANE = 8


def _round_up(x, m):
    return ((x + m - 1) // m) * m


def _tpu_vmem_capacity_bytes():
    try:
        return int(pltpu.get_tpu_info().vmem_capacity_bytes)
    except Exception:
        return 64 * 1024 * 1024  # conservative: assume v7x (64 MiB per TensorCore)


_VMEM_CAP = _tpu_vmem_capacity_bytes()
# vmem_limit_bytes clamp: ~40 MiB on v7x (64 MiB phys), ~80 MiB on v5e/v6e (128 MiB).
_VMEM_CLAMP = min((_VMEM_CAP * 5) // 8, 96 * 1024 * 1024)
# Whole-MLP fusion budget: ~28 MiB on v7x, ~56 MiB on v5e/v6e.
_FUSE_VMEM_BUDGET = min((_VMEM_CAP * 7) // 16, 72 * 1024 * 1024)


def _vmem_limit(need_bytes):
    # need + 50% headroom + slack, clamped to a generation-legal value.
    return int(min(max(need_bytes + need_bytes // 2 + (2 << 20), 8 << 20), _VMEM_CLAMP))


def _pick_tile(dim, max_tile=512):
    """Largest multiple of 128 that divides `dim` and is <= max_tile."""
    best = LANE
    t = LANE
    while t <= min(dim, max_tile):
        if dim % t == 0:
            best = t
        t += LANE
    return best


def _supports_single_buffer():
    """Does this jax expose BlockSpec(pipeline_mode=pl.Buffered(1))?"""
    try:
        pl.BlockSpec((SUBLANE, LANE), lambda i: (0, 0),
                     pipeline_mode=pl.Buffered(buffer_count=1))
        return True
    except Exception:
        return False


_HAS_SINGLE_BUFFER = _supports_single_buffer()


# ----------------------------- kernel bodies --------------------------------
def _make_fused_mlp_kernel(num_layers, final_relu_layer, compute_dtype):
    """One kernel for the whole MLP: refs = (x, w0, b0, w1, b1, ..., out)."""

    def kernel(*refs):
        x_ref = refs[0]
        o_ref = refs[-1]
        h = x_ref[...]                                   # compute_dtype (bf16)
        for i in range(num_layers):
            w_ref = refs[1 + 2 * i]
            b_ref = refs[2 + 2 * i]
            if i < final_relu_layer:
                h = jnp.maximum(h, 0.0)                  # ReLU in carried dtype
            acc = jnp.dot(h, w_ref[...],
                          preferred_element_type=jnp.float32)  # MXU, f32 acc
            h32 = acc + b_ref[...]                       # bias add in f32
            # Carry bf16 between layers (next MXU input is bf16 anyway);
            # keep the final layer in f32 for the output store.
            h = h32.astype(compute_dtype) if i < num_layers - 1 else h32
        o_ref[...] = h.astype(o_ref.dtype)

    return kernel


def _make_relu_linear_tiled_kernel(apply_relu):
    """Tiled y = (relu(x)) @ w + b with f32 VMEM accumulator over the K axis."""

    def kernel(x_ref, w_ref, b_ref, o_ref, acc_ref):
        k = pl.program_id(2)

        @pl.when(k == 0)
        def _init():
            acc_ref[...] = jnp.zeros_like(acc_ref)

        x = x_ref[...]                                   # compute_dtype (bf16)
        if apply_relu:
            x = jnp.maximum(x, 0.0)
        acc_ref[...] += jnp.dot(x, w_ref[...],
                                preferred_element_type=jnp.float32)

        @pl.when(k == pl.num_programs(2) - 1)
        def _finalize():
            o_ref[...] = (acc_ref[...] + b_ref[...]).astype(o_ref.dtype)

    return kernel


# ------------------------------- wrappers ------------------------------------
def _relu_linear_tiled(x, w_p, b_p, *, apply_relu, out_dtype, tm):
    bp, kp = x.shape
    kp2, np_ = w_p.shape
    assert kp == kp2 and b_p.shape == (1, np_)
    tn = _pick_tile(np_)
    tk = _pick_tile(kp)
    xb = jnp.dtype(x.dtype).itemsize
    wb = jnp.dtype(w_p.dtype).itemsize
    ob = jnp.dtype(out_dtype).itemsize
    need = 2 * (tm * tk * xb + tk * tn * wb + tn * 4 + tm * tn * ob) + tm * tn * 4
    return pl.pallas_call(
        _make_relu_linear_tiled_kernel(apply_relu),
        out_shape=jax.ShapeDtypeStruct((bp, np_), out_dtype),
        grid=(bp // tm, np_ // tn, kp // tk),
        in_specs=[
            pl.BlockSpec((tm, tk), lambda i, j, k: (i, k)),
            pl.BlockSpec((tk, tn), lambda i, j, k: (k, j)),
            pl.BlockSpec((1, tn), lambda i, j, k: (0, j)),
        ],
        out_specs=pl.BlockSpec((tm, tn), lambda i, j, k: (i, j)),
        scratch_shapes=[pltpu.VMEM((tm, tn), jnp.float32)],
        compiler_params=pltpu.CompilerParams(
            dimension_semantics=("parallel", "parallel", "arbitrary"),
            vmem_limit_bytes=_vmem_limit(need),
        ),
        cost_estimate=pl.CostEstimate(
            flops=2 * bp * kp * np_,
            transcendentals=0,
            bytes_accessed=int(x.nbytes + w_p.nbytes + b_p.nbytes + bp * np_ * ob),
        ),
    )(x, w_p, b_p)


def init_mlp_params(layer_sizes, key):
    """torch.nn.Linear default init, U(-1/sqrt(fan_in), +1/sqrt(fan_in));
    weights stored already transposed as (in_features, out_features)."""
    layer_sizes = [int(s) for s in layer_sizes]
    params = []
    for i in range(len(layer_sizes) - 1):
        din, dout = layer_sizes[i], layer_sizes[i + 1]
        key, kw, kb = jax.random.split(key, 3)
        bound = 1.0 / math.sqrt(din)
        w_t = jax.random.uniform(kw, (din, dout), jnp.float32, -bound, bound)
        b = jax.random.uniform(kb, (1, dout), jnp.float32, -bound, bound)
        params.append((w_t, b))
    return params


def _pad_params(params, compute_dtype):
    """Zero-pad every weight/bias to lane-dense (multiple-of-128) shapes and
    pre-cast weights to the MXU compute dtype (halves weight DMA for bf16).
    Biases stay f32 (added onto the f32 accumulator)."""
    # TODO(synk): on v7x, fp8 weights would halve weight residency/DMA again.
    padded = []
    for w_t, b in params:
        din, dout = w_t.shape
        din_p, dout_p = _round_up(din, LANE), _round_up(dout, LANE)
        w_p = jnp.zeros((din_p, dout_p), compute_dtype).at[:din, :dout].set(
            w_t.astype(compute_dtype))
        b_p = jnp.zeros((1, dout_p), jnp.float32).at[:, :dout].set(
            b.astype(jnp.float32))
        padded.append((w_p, b_p))
    return padded


def mlp_forward(x, params, final_relu=True, *, compute_dtype=jnp.bfloat16,
                block_batch=256, force_tiled=False):
    """Pallas MLP forward (ReLU before every Linear when final_relu=True)."""
    B, Din = x.shape
    num_layers = len(params)
    final_relu_layer = num_layers if final_relu else num_layers - 1
    dout_last = params[-1][0].shape[1]

    padded = _pad_params(params, compute_dtype)
    din0_p = padded[0][0].shape[0]
    dout_last_p = padded[-1][0].shape[1]

    act_bytes = jnp.dtype(compute_dtype).itemsize
    out_bytes = jnp.dtype(x.dtype).itemsize
    # Row granularity of the batch tile: 8 sublanes, packed rows for sub-32-bit.
    ra = SUBLANE * max(1, 4 // act_bytes)            # 8 for f32, 16 for bf16
    assert block_batch % ra == 0

    weight_bytes = sum(int(w.nbytes + b.nbytes) for w, b in padded)
    wfactor = 1 if _HAS_SINGLE_BUFFER else 2         # weight buffering in VMEM

    def fused_footprint(tile_m):
        # double-buffered x/out tiles + resident weights (+their double buffer
        # if single buffering is unavailable) + per-layer activation temps.
        return (2 * tile_m * din0_p * act_bytes
                + 2 * tile_m * dout_last_p * out_bytes
                + wfactor * weight_bytes
                + sum(tile_m * w.shape[1] * (4 + act_bytes) for w, _ in padded))

    tm = min(block_batch, _round_up(B, ra))
    use_fused = (not force_tiled) and fused_footprint(tm) <= _FUSE_VMEM_BUDGET

    if use_fused and B > ra:
        # Guarantee >=2 grid steps over the batch when possible: DMA/compute
        # overlap on every generation and both TensorCores busy on v7x.
        tm = min(tm, _round_up(_round_up(B, ra) // 2, ra))
    tm = max(tm, ra)
    b_pad = _round_up(B, tm)

    # Pad + cast the input in ONE op, directly in the MXU compute dtype
    # (half the HBM traffic of an f32 staging copy).
    # TODO(synk): hoist this pad/cast out of the hot path when the MLP is
    # applied repeatedly to same-shaped batches.
    if (b_pad, din0_p) == (B, Din):
        x_p = x.astype(compute_dtype)
    else:
        x_p = jnp.zeros((b_pad, din0_p), compute_dtype).at[:B, :Din].set(
            x.astype(compute_dtype))

    def run_tiled():
        h = x_p
        for i, (w_p, b_p) in enumerate(padded):
            last = (i == num_layers - 1)
            h = _relu_linear_tiled(
                h, w_p, b_p,
                apply_relu=(i < final_relu_layer),
                out_dtype=(x.dtype if last else compute_dtype),  # bf16 between layers
                tm=tm)
        return h[:B, :dout_last]

    if not use_fused:
        return run_tiled()

    # ---------------- fully fused single-kernel path -------------------------
    flops = sum(2 * b_pad * w.shape[0] * w.shape[1] for w, _ in padded)
    need = fused_footprint(tm)
    kernel = _make_fused_mlp_kernel(num_layers, final_relu_layer, compute_dtype)

    def run_fused(single_buffer_weights):
        in_specs = [pl.BlockSpec((tm, din0_p), lambda i: (i, 0))]
        args = [x_p]
        for w_p, b_p in padded:
            dpi, dpo = w_p.shape
            if single_buffer_weights:
                # Constant index_map across the grid => single buffer is enough.
                in_specs.append(pl.BlockSpec((dpi, dpo), lambda i: (0, 0),
                                             pipeline_mode=pl.Buffered(buffer_count=1)))
                in_specs.append(pl.BlockSpec((1, dpo), lambda i: (0, 0),
                                             pipeline_mode=pl.Buffered(buffer_count=1)))
            else:
                in_specs.append(pl.BlockSpec((dpi, dpo), lambda i: (0, 0)))
                in_specs.append(pl.BlockSpec((1, dpo), lambda i: (0, 0)))
            args.extend([w_p, b_p])
        wf = 1 if single_buffer_weights else 2
        limit = _vmem_limit(need + (wf - wfactor) * weight_bytes)
        return pl.pallas_call(
            kernel,
            out_shape=jax.ShapeDtypeStruct((b_pad, dout_last_p), x.dtype),
            grid=(b_pad // tm,),
            in_specs=in_specs,
            out_specs=pl.BlockSpec((tm, dout_last_p), lambda i: (i, 0)),
            compiler_params=pltpu.CompilerParams(
                dimension_semantics=("parallel",),
                vmem_limit_bytes=limit,
            ),
            cost_estimate=pl.CostEstimate(
                flops=int(flops),
                transcendentals=0,
                bytes_accessed=int(x_p.nbytes + weight_bytes
                                   + b_pad * dout_last_p * out_bytes),
            ),
        )(*args)

    out_p = None
    for sb in ([True, False] if _HAS_SINGLE_BUFFER else [False]):
        try:
            out_p = run_fused(sb)
            break
        except Exception:
            out_p = None          # graceful capability fallback
    if out_p is None:
        return run_tiled()        # last resort: per-layer tiled path

    if (b_pad, dout_last_p) == (B, dout_last):
        return out_p
    return out_p[:B, :dout_last]


def mlp_reference(x, params, final_relu=True, compute_dtype=jnp.float32):
    """Pure-JAX reference; compute_dtype mirrors the kernel's MXU input dtype."""
    num_layers = len(params)
    final_relu_layer = num_layers if final_relu else num_layers - 1
    h = x.astype(jnp.float32)
    for i, (w_t, b) in enumerate(params):
        if i < final_relu_layer:
            h = jnp.maximum(h, 0.0)
        h = jnp.dot(h.astype(compute_dtype), w_t.astype(compute_dtype),
                    preferred_element_type=jnp.float32) + b.astype(jnp.float32)
    return h


if __name__ == "__main__":
    key = jax.random.PRNGKey(0)

    # --- Case 1: small MLP -> fully fused single-kernel path (2 batch steps) -
    layer_sizes = [32, 64, 16]          # MLP([32, 64, 16], final_relu=True)
    batch = 32
    key, kx, kp = jax.random.split(key, 3)
    x = jax.random.normal(kx, (batch, layer_sizes[0]), jnp.float32)
    params = init_mlp_params(layer_sizes, kp)

    out = mlp_forward(x, params, final_relu=True)
    out = jax.block_until_ready(out)
    assert out.shape == (batch, layer_sizes[-1])

    ref_matched = mlp_reference(x, params, True, jnp.bfloat16)  # same MXU dtype
    ref_f32 = mlp_reference(x, params, True, jnp.float32)
    assert jnp.allclose(out, ref_matched, atol=5e-3, rtol=5e-3), \
        "fused: mismatch vs matched-precision reference"
    assert jnp.allclose(out, ref_f32, atol=3e-2, rtol=3e-2), \
        "fused: mismatch vs f32 reference"

    # --- Case 2: force the tiled (M, N, K) per-layer path --------------------
    layer_sizes2 = [300, 256, 96]
    batch2 = 24
    key, kx2, kp2 = jax.random.split(key, 3)
    x2 = jax.random.normal(kx2, (batch2, layer_sizes2[0]), jnp.float32)
    params2 = init_mlp_params(layer_sizes2, kp2)

    out2 = mlp_forward(x2, params2, final_relu=False, force_tiled=True)
    out2 = jax.block_until_ready(out2)
    assert out2.shape == (batch2, layer_sizes2[-1])

    ref2_matched = mlp_reference(x2, params2, False, jnp.bfloat16)
    ref2_f32 = mlp_reference(x2, params2, False, jnp.float32)
    assert jnp.allclose(out2, ref2_matched, atol=5e-3, rtol=5e-3), \
        "tiled: mismatch vs matched-precision reference"
    assert jnp.allclose(out2, ref2_f32, atol=3e-2, rtol=3e-2), \
        "tiled: mismatch vs f32 reference"

    print("KERNEL_OK")
</pallas_src>

<mosaic_0001>
module attributes {stable_mosaic.version = 11 : i64} {
  func.func @kernel(%arg0: i32, %arg1: memref<16x128xbf16, #tpu.memory_space<vmem>>, %arg2: memref<128x128xbf16, #tpu.memory_space<vmem>>, %arg3: memref<1x128xf32, #tpu.memory_space<vmem>>, %arg4: memref<128x128xbf16, #tpu.memory_space<vmem>>, %arg5: memref<1x128xf32, #tpu.memory_space<vmem>>, %arg6: memref<16x128xf32, #tpu.memory_space<vmem>>) attributes {dimension_semantics = [#tpu.dimension_semantics<parallel>], iteration_bounds = array<i64: 2>, scalar_prefetch = 0 : i64, scratch_operands = 0 : i64, tpu.core_type = #tpu.core_type<tc>, window_params = [{transform_indices = @transform_0, window_bounds = array<i64: 16, 128>}, {pipeline_mode = #tpu.pipeline_mode<synchronous>, transform_indices = @transform_1, window_bounds = array<i64: 128, 128>}, {pipeline_mode = #tpu.pipeline_mode<synchronous>, transform_indices = @transform_2, window_bounds = array<i64: 1, 128>}, {pipeline_mode = #tpu.pipeline_mode<synchronous>, transform_indices = @transform_3, window_bounds = array<i64: 128, 128>}, {pipeline_mode = #tpu.pipeline_mode<synchronous>, transform_indices = @transform_4, window_bounds = array<i64: 1, 128>}, {transform_indices = @transform_5, window_bounds = array<i64: 16, 128>}]} {
    %c0 = arith.constant 0 : index
    %c0_0 = arith.constant 0 : index
    %0 = vector.load %arg1[%c0, %c0_0] : memref<16x128xbf16, #tpu.memory_space<vmem>>, vector<16x128xbf16>
    %cst = arith.constant 0.000000e+00 : bf16
    %1 = vector.broadcast %cst : bf16 to vector<16x128xbf16>
    %2 = arith.maximumf %0, %1 : vector<16x128xbf16>
    %c0_1 = arith.constant 0 : index
    %c0_2 = arith.constant 0 : index
    %3 = vector.load %arg2[%c0_1, %c0_2] : memref<128x128xbf16, #tpu.memory_space<vmem>>, vector<128x128xbf16>
    %cst_3 = arith.constant dense<0.000000e+00> : vector<16x128xf32>
    %4 = tpu.matmul %2, %3, %cst_3 {dimension_numbers = #tpu.dot_dimension_numbers<[1], [0], [0], [1], [0, 0, 1, 1], [], []>} : vector<16x128xbf16>, vector<128x128xbf16>, vector<16x128xf32> -> vector<16x128xf32>
    %c0_4 = arith.constant 0 : index
    %c0_5 = arith.constant 0 : index
    %5 = vector.load %arg3[%c0_4, %c0_5] : memref<1x128xf32, #tpu.memory_space<vmem>>, vector<1x128xf32>
    %6 = vector.broadcast %5 : vector<1x128xf32> to vector<16x128xf32>
    %7 = arith.addf %4, %6 : vector<16x128xf32>
    %8 = arith.truncf %7 : vector<16x128xf32> to vector<16x128xbf16>
    %cst_6 = arith.constant 0.000000e+00 : bf16
    %9 = vector.broadcast %cst_6 : bf16 to vector<16x128xbf16>
    %10 = arith.maximumf %8, %9 : vector<16x128xbf16>
    %c0_7 = arith.constant 0 : index
    %c0_8 = arith.constant 0 : index
    %11 = vector.load %arg4[%c0_7, %c0_8] : memref<128x128xbf16, #tpu.memory_space<vmem>>, vector<128x128xbf16>
    %cst_9 = arith.constant dense<0.000000e+00> : vector<16x128xf32>
    %12 = tpu.matmul %10, %11, %cst_9 {dimension_numbers = #tpu.dot_dimension_numbers<[1], [0], [0], [1], [0, 0, 1, 1], [], []>} : vector<16x128xbf16>, vector<128x128xbf16>, vector<16x128xf32> -> vector<16x128xf32>
    %c0_10 = arith.constant 0 : index
    %c0_11 = arith.constant 0 : index
    %13 = vector.load %arg5[%c0_10, %c0_11] : memref<1x128xf32, #tpu.memory_space<vmem>>, vector<1x128xf32>
    %14 = vector.broadcast %13 : vector<1x128xf32> to vector<16x128xf32>
    %15 = arith.addf %12, %14 : vector<16x128xf32>
    %c0_12 = arith.constant 0 : index
    %c0_13 = arith.constant 0 : index
    %16 = vector.load %arg6[%c0_12, %c0_13] : memref<16x128xf32, #tpu.memory_space<vmem>>, vector<16x128xf32>
    tpu.vector_store %arg6[%c0_12, %c0_13], %15 {strides = array<i32>} : memref<16x128xf32, #tpu.memory_space<vmem>>, vector<16x128xf32>,
    return
  }
  func.func @transform_0(%arg0: i32) -> (i32, i32) {
    %c0_i32 = arith.constant 0 : i32
    %c0_i32_0 = arith.constant 0 : i32
    return %arg0, %c0_i32 : i32, i32
  }
  func.func @transform_1(%arg0: i32) -> (i32, i32) {
    %c0_i32 = arith.constant 0 : i32
    %c0_i32_0 = arith.constant 0 : i32
    %c0_i32_1 = arith.constant 0 : i32
    return %c0_i32, %c0_i32_0 : i32, i32
  }
  func.func @transform_2(%arg0: i32) -> (i32, i32) {
    %c0_i32 = arith.constant 0 : i32
    %c0_i32_0 = arith.constant 0 : i32
    %c0_i32_1 = arith.constant 0 : i32
    return %c0_i32, %c0_i32_0 : i32, i32
  }
  func.func @transform_3(%arg0: i32) -> (i32, i32) {
    %c0_i32 = arith.constant 0 : i32
    %c0_i32_0 = arith.constant 0 : i32
    %c0_i32_1 = arith.constant 0 : i32
    return %c0_i32, %c0_i32_0 : i32, i32
  }
  func.func @transform_4(%arg0: i32) -> (i32, i32) {
    %c0_i32 = arith.constant 0 : i32
    %c0_i32_0 = arith.constant 0 : i32
    %c0_i32_1 = arith.constant 0 : i32
    return %c0_i32, %c0_i32_0 : i32, i32
  }
  func.func @transform_5(%arg0: i32) -> (i32, i32) {
    %c0_i32 = arith.constant 0 : i32
    %c0_i32_0 = arith.constant 0 : i32
    return %arg0, %c0_i32 : i32, i32
  }
}

module attributes {stable_mosaic.version = 11 : i64} {
  func.func @kernel(%arg0: i32, %arg1: memref<16x128xbf16, #tpu.memory_space<vmem>>, %arg2: memref<128x128xbf16, #tpu.memory_space<vmem>>, %arg3: memref<1x128xf32, #tpu.memory_space<vmem>>, %arg4: memref<128x128xbf16, #tpu.memory_space<vmem>>, %arg5: memref<1x128xf32, #tpu.memory_space<vmem>>, %arg6: memref<16x128xf32, #tpu.memory_space<vmem>>) attributes {dimension_semantics = [#tpu.dimension_semantics<parallel>], iteration_bounds = array<i64: 2>, scalar_prefetch = 0 : i64, scratch_operands = 0 : i64, tpu.core_type = #tpu.core_type<tc>, window_params = [{transform_indices = @transform_0, window_bounds = array<i64: 16, 128>}, {pipeline_mode = #tpu.pipeline_mode<synchronous>, transform_indices = @transform_1, window_bounds = array<i64: 128, 128>}, {pipeline_mode = #tpu.pipeline_mode<synchronous>, transform_indices = @transform_2, window_bounds = array<i64: 1, 128>}, {pipeline_mode = #tpu.pipeline_mode<synchronous>, transform_indices = @transform_3, window_bounds = array<i64: 128, 128>}, {pipeline_mode = #tpu.pipeline_mode<synchronous>, transform_indices = @transform_4, window_bounds = array<i64: 1, 128>}, {transform_indices = @transform_5, window_bounds = array<i64: 16, 128>}]} {
    %c0 = arith.constant 0 : index
    %c0_0 = arith.constant 0 : index
    %0 = vector.load %arg1[%c0, %c0_0] : memref<16x128xbf16, #tpu.memory_space<vmem>>, vector<16x128xbf16>
    %cst = arith.constant 0.000000e+00 : bf16
    %1 = vector.broadcast %cst : bf16 to vector<16x128xbf16>
    %2 = arith.maximumf %0, %1 : vector<16x128xbf16>
    %c0_1 = arith.constant 0 : index
    %c0_2 = arith.constant 0 : index
    %3 = vector.load %arg2[%c0_1, %c0_2] : memref<128x128xbf16, #tpu.memory_space<vmem>>, vector<128x128xbf16>
    %cst_3 = arith.constant dense<0.000000e+00> : vector<16x128xf32>
    %4 = tpu.matmul %2, %3, %cst_3 {dimension_numbers = #tpu.dot_dimension_numbers<[1], [0], [0], [1], [0, 0, 1, 1], [], []>} : vector<16x128xbf16>, vector<128x128xbf16>, vector<16x128xf32> -> vector<16x128xf32>
    %c0_4 = arith.constant 0 : index
    %c0_5 = arith.constant 0 : index
    %5 = vector.load %arg3[%c0_4, %c0_5] : memref<1x128xf32, #tpu.memory_space<vmem>>, vector<1x128xf32>
    %6 = vector.broadcast %5 : vector<1x128xf32> to vector<16x128xf32>
    %7 = arith.addf %4, %6 : vector<16x128xf32>
    %8 = arith.truncf %7 : vector<16x128xf32> to vector<16x128xbf16>
    %cst_6 = arith.constant 0.000000e+00 : bf16
    %9 = vector.broadcast %cst_6 : bf16 to vector<16x128xbf16>
    %10 = arith.maximumf %8, %9 : vector<16x128xbf16>
    %c0_7 = arith.constant 0 : index
    %c0_8 = arith.constant 0 : index
    %11 = vector.load %arg4[%c0_7, %c0_8] : memref<128x128xbf16, #tpu.memory_space<vmem>>, vector<128x128xbf16>
    %cst_9 = arith.constant dense<0.000000e+00> : vector<16x128xf32>
    %12 = tpu.matmul %10, %11, %cst_9 {dimension_numbers = #tpu.dot_dimension_numbers<[1], [0], [0], [1], [0, 0, 1, 1], [], []>} : vector<16x128xbf16>, vector<128x128xbf16>, vector<16x128xf32> -> vector<16x128xf32>
    %c0_10 = arith.constant 0 : index
    %c0_11 = arith.constant 0 : index
    %13 = vector.load %arg5[%c0_10, %c0_11] : memref<1x128xf32, #tpu.memory_space<vmem>>, vector<1x128xf32>
    %14 = vector.broadcast %13 : vector<1x128xf32> to vector<16x128xf32>
    %15 = arith.addf %12, %14 : vector<16x128xf32>
    %c0_12 = arith.constant 0 : index
    %c0_13 = arith.constant 0 : index
    %16 = vector.load %arg6[%c0_12, %c0_13] : memref<16x128xf32, #tpu.memory_space<vmem>>, vector<16x128xf32>
    tpu.vector_store %arg6[%c0_12, %c0_13], %15 {strides = array<i32>} : memref<16x128xf32, #tpu.memory_space<vmem>>, vector<16x128xf32>,
    return
  }
  func.func @transform_0(%arg0: i32) -> (i32, i32) {
    %c0_i32 = arith.constant 0 : i32
    %c0_i32_0 = arith.constant 0 : i32
    return %arg0, %c0_i32 : i32, i32
  }
  func.func @transform_1(%arg0: i32) -> (i32, i32) {
    %c0_i32 = arith.constant 0 : i32
    %c0_i32_0 = arith.constant 0 : i32
    %c0_i32_1 = arith.constant 0 : i32
    return %c0_i32, %c0_i32_0 : i32, i32
  }
  func.func @transform_2(%arg0: i32) -> (i32, i32) {
    %c0_i32 = arith.constant 0 : i32
    %c0_i32_0 = arith.constant 0 : i32
    %c0_i32_1 = arith.constant 0 : i32
    return %c0_i32, %c0_i32_0 : i32, i32
  }
  func.func @transform_3(%arg0: i32) -> (i32, i32) {
    %c0_i32 = arith.constant 0 : i32
    %c0_i32_0 = arith.constant 0 : i32
    %c0_i32_1 = arith.constant 0 : i32
    return %c0_i32, %c0_i32_0 : i32, i32
  }
  func.func @transform_4(%arg0: i32) -> (i32, i32) {
    %c0_i32 = arith.constant 0 : i32
    %c0_i32_0 = arith.constant 0 : i32
    %c0_i32_1 = arith.constant 0 : i32
    return %c0_i32, %c0_i32_0 : i32, i32
  }
  func.func @transform_5(%arg0: i32) -> (i32, i32) {
    %c0_i32 = arith.constant 0 : i32
    %c0_i32_0 = arith.constant 0 : i32
    return %arg0, %c0_i32 : i32, i32
  }
}

module attributes {stable_mosaic.version = 11 : i64} {
  func.func @kernel(%arg0: i32, %arg1: i32, %arg2: i32, %arg3: memref<16x128xbf16, #tpu.memory_space<vmem>>, %arg4: memref<128x128xbf16, #tpu.memory_space<vmem>>, %arg5: memref<1x128xf32, #tpu.memory_space<vmem>>, %arg6: memref<16x128xbf16, #tpu.memory_space<vmem>>, %arg7: memref<16x128xf32, #tpu.memory_space<vmem>>) attributes {dimension_semantics = [#tpu.dimension_semantics<parallel>, #tpu.dimension_semantics<parallel>, #tpu.dimension_semantics<arbitrary>], iteration_bounds = array<i64: 2, 1, 1>, scalar_prefetch = 0 : i64, scratch_operands = 1 : i64, tpu.core_type = #tpu.core_type<tc>, window_params = [{transform_indices = @transform_0, window_bounds = array<i64: 16, 128>}, {transform_indices = @transform_1, window_bounds = array<i64: 128, 128>}, {transform_indices = @transform_2, window_bounds = array<i64: 1, 128>}, {transform_indices = @transform_3, window_bounds = array<i64: 16, 128>}]} {
    %c0_i32 = arith.constant 0 : i32
    %0 = arith.cmpi eq, %arg2, %c0_i32 : i32
    %1 = arith.extui %0 : i1 to i32
    %c0_i32_0 = arith.constant 0 : i32
    %2 = arith.cmpi ne, %1, %c0_i32_0 : i32
    scf.if %2 {
      %cst_11 = arith.constant 0.000000e+00 : f32
      %14 = vector.broadcast %cst_11 : f32 to vector<16x128xf32>
      %c0_12 = arith.constant 0 : index
      %c0_13 = arith.constant 0 : index
      %15 = vector.load %arg7[%c0_12, %c0_13] : memref<16x128xf32, #tpu.memory_space<vmem>>, vector<16x128xf32>
      tpu.vector_store %arg7[%c0_12, %c0_13], %14 {strides = array<i32>} : memref<16x128xf32, #tpu.memory_space<vmem>>, vector<16x128xf32>,
    } else {
    }
    %c0 = arith.constant 0 : index
    %c0_1 = arith.constant 0 : index
    %3 = vector.load %arg3[%c0, %c0_1] : memref<16x128xbf16, #tpu.memory_space<vmem>>, vector<16x128xbf16>
    %cst = arith.constant 0.000000e+00 : bf16
    %4 = vector.broadcast %cst : bf16 to vector<16x128xbf16>
    %5 = arith.maximumf %3, %4 : vector<16x128xbf16>
    %c0_2 = arith.constant 0 : index
    %c0_3 = arith.constant 0 : index
    %6 = vector.load %arg7[%c0_2, %c0_3] : memref<16x128xf32, #tpu.memory_space<vmem>>, vector<16x128xf32>
    %c0_4 = arith.constant 0 : index
    %c0_5 = arith.constant 0 : index
    %7 = vector.load %arg4[%c0_4, %c0_5] : memref<128x128xbf16, #tpu.memory_space<vmem>>, vector<128x128xbf16>
    %cst_6 = arith.constant dense<0.000000e+00> : vector<16x128xf32>
    %8 = tpu.matmul %5, %7, %cst_6 {dimension_numbers = #tpu.dot_dimension_numbers<[1], [0], [0], [1], [0, 0, 1, 1], [], []>} : vector<16x128xbf16>, vector<128x128xbf16>, vector<16x128xf32> -> vector<16x128xf32>
    %9 = arith.addf %6, %8 : vector<16x128xf32>
    %c0_7 = arith.constant 0 : index
    %c0_8 = arith.constant 0 : index
    %10 = vector.load %arg7[%c0_7, %c0_8] : memref<16x128xf32, #tpu.memory_space<vmem>>, vector<16x128xf32>
    tpu.vector_store %arg7[%c0_7, %c0_8], %9 {strides = array<i32>} : memref<16x128xf32, #tpu.memory_space<vmem>>, vector<16x128xf32>,
    %c0_i32_9 = arith.constant 0 : i32
    %11 = arith.cmpi eq, %arg2, %c0_i32_9 : i32
    %12 = arith.extui %11 : i1 to i32
    %c0_i32_10 = arith.constant 0 : i32
    %13 = arith.cmpi ne, %12, %c0_i32_10 : i32
    scf.if %13 {
      %c0_11 = arith.constant 0 : index
      %c0_12 = arith.constant 0 : index
      %14 = vector.load %arg7[%c0_11, %c0_12] : memref<16x128xf32, #tpu.memory_space<vmem>>, vector<16x128xf32>
      %c0_13 = arith.constant 0 : index
      %c0_14 = arith.constant 0 : index
      %15 = vector.load %arg5[%c0_13, %c0_14] : memref<1x128xf32, #tpu.memory_space<vmem>>, vector<1x128xf32>
      %16 = vector.broadcast %15 : vector<1x128xf32> to vector<16x128xf32>
      %17 = arith.addf %14, %16 : vector<16x128xf32>
      %18 = arith.truncf %17 : vector<16x128xf32> to vector<16x128xbf16>
      %c0_15 = arith.constant 0 : index
      %c0_16 = arith.constant 0 : index
      %19 = vector.load %arg6[%c0_15, %c0_16] : memref<16x128xbf16, #tpu.memory_space<vmem>>, vector<16x128xbf16>
      tpu.vector_store %arg6[%c0_15, %c0_16], %18 {strides = array<i32>} : memref<16x128xbf16, #tpu.memory_space<vmem>>, vector<16x128xbf16>,
    } else {
    }
    return
  }
  func.func @transform_0(%arg0: i32, %arg1: i32, %arg2: i32) -> (i32, i32) {
    %c0_i32 = arith.constant 0 : i32
    return %arg0, %arg2 : i32, i32
  }
  func.func @transform_1(%arg0: i32, %arg1: i32, %arg2: i32) -> (i32, i32) {
    %c0_i32 = arith.constant 0 : i32
    return %arg2, %arg1 : i32, i32
  }
  func.func @transform_2(%arg0: i32, %arg1: i32, %arg2: i32) -> (i32, i32) {
    %c0_i32 = arith.constant 0 : i32
    %c0_i32_0 = arith.constant 0 : i32
    return %c0_i32, %arg1 : i32, i32
  }
  func.func @transform_3(%arg0: i32, %arg1: i32, %arg2: i32) -> (i32, i32) {
    %c0_i32 = arith.constant 0 : i32
    return %arg0, %arg1 : i32, i32
  }
}

</mosaic_0001>

<bundles_post_ra>
// kernel: tpu_custom_call.1
= control target key start
LH: loop header
LB: loop body
LE: loop exit
PB: predicated region body
PF: predicated region fallthrough
CT: control target
= control target key end

     0   :  { %10 = vsyncpa [#allocation3], 0  ;;  %s1205_s0 = inlined_call_operand.hbm [shape: bf16[32,128], index: 0, kind: input, shape index: {}]   ;;  %s1206_s1 = inlined_call_operand.hbm [shape: bf16[128,128], index: 1, kind: input, shape index: {}]   ;;  %s1207_s2 = inlined_call_operand.vmem [shape: f32[1,128], index: 2, kind: input, shape index: {}]   ;;  %s1208_s3 = inlined_call_operand.hbm [shape: bf16[128,128], index: 3, kind: input, shape index: {}]   ;;  %s1209_s4 = inlined_call_operand.vmem [shape: f32[1,128], index: 4, kind: input, shape index: {}]   ;;  %s1210_s5 = inlined_call_operand.hbm [shape: f32[32,128], index: 5, kind: output, shape index: {}]  }
   0x1   :  { %12 = vsyncpa [#allocation3 + $0x1], 0 }
   0x2   :  { %13 = vsyncpa [#allocation6], 0 }
   0x3   :  { %14 = vsyncpa [#allocation4], 0 }
   0x4   :  { %16 = vsyncpa [#allocation4 + $0x1], 0  ;;  %s997_s18 = smov 0   ;;  %s999_s19 = smov 0  }
   0x5   :  { %s1001_s20 = smov 0   ;;  %s1003_s21 = smov 0  }
   0x6 LB: > { %s1018_s22 = sadd.s32 4294967295, %s954_s21   ;;  %s619_s23 = sadd.s32 4294967294, %s954_s21   ;;  %s954_s21 = sphi %s1003_s21, %s1233_s21   ;;  %s950_s20 = sphi %s1001_s20, %s1232_s20   ;;  %s946_s19 = sphi %s999_s19, %s1231_s19   ;;  %s942_s18 = sphi %s997_s18, %s1230_s18  }
   0x7   : > { %p42_p0 = scmp.ne.s32.totalorder %s946_s19, %s942_s18  ;;  %p1211_p1 = scmp.eq.s32.totalorder %s1018_s22, 0 }
   0x8   : > { %p150_p2 = scmp.eq.s32.totalorder %s1018_s22, 1  ;;  %p156_p3 = scmp.eq.s32.totalorder %s619_s23, 1 }
   0x9   : > { %p1027_p4 = por %p1211_p1, %p42_p0  ;;  %p620_p5 = scmp.ge.s32.totalorder %s954_s21, 1 }
   0xa   : > { %p1032_p6 = por %p156_p3, %p42_p0  ;;  %p163_p7 = scmp.lt.s32.totalorder %s954_s21, 3 }
   0xb   : > { %s1216_s24 = scalar_select %p1027_p4, 1, 0 }
   0xc   : > { %s1217_s25 = scalar_select %p1032_p6, 1, 0 }
   0xd   : > { %p1037_p8 = pnand %p620_p5, %p163_p7  ;;  %s956_s27 = smov [#allocation5]  }
   0xe   : > { %s175_s28 = sshll.u32 %s956_s27, 4  ;;  %s957_s30 = smov [#allocation7]   ;;  %s176_s28 = int_to_ptr.vmem [resolvable:$true] %s175_s28 }
   0xf   : > { %s1218_s26 = scalar_select %p1037_p8, 1, 0 }
  0x10   : > { %p728_p9 = pneg %p1037_p8  ;;  %s191_s6 = sshll.u32 %s957_s30, 4  ;;  %s192_s6 = int_to_ptr.vmem [resolvable:$true] %s191_s6 }
  0x11   : > { %s817_s7 = scalar_lea.vmem %s176_s28, 1024  ;;  %p825_p5 = scmp.lt.s32.totalorder %s176_s28, %s176_s28 }
  0x12   : > { %p1046_p11 = pnand %p728_p9, %p1211_p1  ;;  %p818_p13 = scmp.ne.s32.totalorder %s176_s28, %s817_s7 }
  0x13   : > { %p826_p7 = scmp.lt.s32.totalorder %s817_s7, %s817_s7 }
  0x14   : > { %p808_p12 = pneg %p1046_p11 }
  0x15   : > { %p827_p10 = por %p826_p7, %p825_p5 }
  0x16   : > { %p820_p0 = pnand %p818_p13, %p808_p12 }
  0x18   : > { %p821_p3 = pneg %p820_p0 }
  0x1a   : > { %p828_p9 = pnand %p827_p10, %p821_p3 }
  0x1c   : > { %831 = shalt.err (!%p828_p9)
}
  0x1d   : > { %s1212_s8 = smov 64   ;;  %s959_s9 = smov 4  }
  0x1e   : > { %731 = dma.hbm_to_vmem [thread:$0]  (!%p1046_p11), %s1206_s1, 1024, %s176_s28, [#allocation6], %s1212_s8, %s1212_s8, %s959_s9  }
  0x1f   : > { %s843_s12 = scalar_lea.vmem %s192_s6, 1024  ;;  %p851_p10 = scmp.lt.s32.totalorder %s192_s6, %s192_s6 }
  0x20   : > { %p844_p13 = scmp.ne.s32.totalorder %s192_s6, %s843_s12  ;;  %p852_p3 = scmp.lt.s32.totalorder %s843_s12, %s843_s12 }
  0x22   : > { %p846_p0 = pnand %p844_p13, %p808_p12  ;;  %p853_p7 = por %p852_p3, %p851_p10 }
  0x24   : > { %p847_p5 = pneg %p846_p0 }
  0x26   : > { %p854_p9 = pnand %p853_p7, %p847_p5 }
  0x28   : > { %857 = shalt.err (!%p854_p9)
}
  0x29   : > { %734 = dma.hbm_to_vmem [thread:$0]  (!%p1046_p11), %s1208_s3, 1024, %s192_s6, [#allocation6], %s1212_s8, %s1212_s8, %s959_s9  }
  0x2a   : > { %s1075_s15 = sadd.s32 1, %s954_s21   ;;  %s29_s16 = sadd.s32 1, %s950_s20 }
  0x2b   : > { %s26_s17 = ssub.s32 %s954_s21, %s1075_s15  ;;  %p36_p12 = scmp.ne.s32.totalorder %s950_s20, %s946_s19 }
  0x2c   : > { %p27_p13 = scmp.eq.s32.totalorder %s26_s17, 0  ;;  %p37_p0 = scmp.eq.s32.totalorder %s954_s21, 0 }
  0x2d   : > { %p1085_p5 = por %p150_p2, %p36_p12  ;;  %p745_p10 = scmp.lt.s32.totalorder %s954_s21, 2 }
  0x2e   : > { %s1091_s27 = scalar_select %p27_p13, %s950_s20, %s29_s16  }
  0x2f   : > { %s1220_s23 = scalar_select %p1085_p5, 1, 0 }
  0x30   : > { %p38_p3 = por %p37_p0, %p36_p12  ;;  %s208_s28 = sand.u32 1, %s950_s20  }
  0x31   : > { %s624_s29 = sshll.u32 %s208_s28, 3  ;;  %s656_s30 = sshll.u32 %s954_s21, 7 }
  0x32   : > { %s1098_s10 = scalar_lea.hbm %s1205_s0, %s656_s30  ;;  %s212_s11 = scalar_lea.vmem [#allocation2], %s624_s29 }
  0x33   : > { %s219_s12 = sshll.u32 %s212_s11, 4  ;;  %p1102_p2 = pnand %p745_p10, %p38_p3  ;;  %s1100_s12 = int_to_ptr.vmem [resolvable:$true] %s219_s12 }
  0x34   : > { %s1106_s14 = scalar_lea.sflag [#allocation3], %s208_s28  ;;  %s858_s16 = scalar_lea.hbm %s1098_s10, 128 }
  0x35   : > { %p859_p11 = scmp.ne.s32.totalorder %s1098_s10, %s858_s16  ;;  %p860_p7 = pneg %p1102_p2 }
  0x36   : > { %s863_s29 = scalar_lea.hbm %s1205_s0, 256  ;;  %p864_p13 = scmp.lt.s32.totalorder %s1098_s10, %s1205_s0 }
  0x37   : > { %p861_p9 = pnand %p860_p7, %p859_p11  ;;  %p865_p0 = scmp.lt.s32.totalorder %s863_s29, %s858_s16 }
  0x39   : > { %p862_p12 = pneg %p861_p9  ;;  %p866_p10 = por %p865_p0, %p864_p13 }
  0x3b   : > { %p867_p3 = pnand %p866_p10, %p862_p12 }
  0x3d   : > { %870 = shalt.err (!%p867_p3)
}
  0x3e   : > { %s871_s28 = scalar_lea.vmem %s1100_s12, 128  ;;  %s960_s11 = smov [#allocation2]  }
  0x3f   : > { %p872_p1 = scmp.ne.s32.totalorder %s1100_s12, %s871_s28  ;;  %s876_s8 = sshll.u32 %s960_s11, 4  ;;  %s877_s8 = int_to_ptr.vmem [resolvable:$false] %s876_s8 }
  0x40   : > { %s878_s17 = scalar_lea.vmem %s877_s8, 256  ;;  %p879_p9 = scmp.lt.s32.totalorder %s1100_s12, %s877_s8 }
  0x41   : > { %p874_p6 = pnand %p872_p1, %p860_p7  ;;  %p880_p5 = scmp.lt.s32.totalorder %s878_s17, %s871_s28 }
  0x43   : > { %p875_p11 = pneg %p874_p6  ;;  %p881_p4 = por %p880_p5, %p879_p9 }
  0x45   : > { %p882_p8 = pnand %p881_p4, %p875_p11 }
  0x47   : > { %885 = shalt.err (!%p882_p8)
}
  0x48   : > { %s1222_s16 = smov 64   ;;  %p1223_p1 = scmp.ne.s32.totalorder %s1218_s26, 0 }
  0x49   : > { %738 = dma.hbm_to_vmem [thread:$0]  (!%p1102_p2), %s1098_s10, 128, %s1100_s12, %s1106_s14, %s1222_s16, %s1222_s16, %s959_s9  }
  0x4a   : > { %231 = sbr.rel (%p1223_p1) target bundleno = 533 (0x215), region = 40  ;;  %s1133_s30 = sand.u32 (!%p1223_p1), 1, %s946_s19  }
  0x4b   : > { %s628_s8 = sshll.u32 (!%p1223_p1), %s1133_s30, 3  ;;  %s234_s29 = scalar_lea.sflag (!%p1223_p1), [#allocation3], %s1133_s30 }
  0x4c   : > { %s1137_s6 = scalar_lea.vmem (!%p1223_p1), [#allocation2], %s628_s8  ;;  %p1224_p4 = scmp.ne.s32.totalorder (!%p1223_p1), %s1216_s24, 0 }
  0x4f   : > { %929 = dma.done.wait (%p1224_p4), %s234_s29, 128  }
  0x50   : > { %931 = vsyncadd (%p1224_p4), %s234_s29, 4294967168  ;;  %p1225_p6 = scmp.eq.s32.totalorder %s1018_s22, 0 }
  0x52   : > { %933 = dma.done.wait (%p1225_p6), [#allocation6], 2048   ;;  %p1226_p8 = pmov %p1225_p6 }
  0x53   : > { %v961_v0 = vmov 0.0   ;;  %vm962_vm0 = vmmov 0   ;;  %v790_v1 = vld [vmem:[#allocation5 + $0x38] sm:$0xff]   ;;  %v791_v2 = vld [vmem:[#allocation5 + $0x30] sm:$0xff]   ;;  %v792_v3 = vld [vmem:[#allocation5 + $0x28] sm:$0xff]   ;;  %v963_v15 = vmov 0  }
  0x54   : > { %935 = vsyncadd (%p1226_p8), [#allocation6], 4294965248  ;;  %676 = vmatprep.subr.bf16.mxu0 %v961_v0  ;;  %692 = vmatprep.mubr.msk.bf16.mxu0 %vm962_vm0, %v961_v0  ;;  %v798_v4 = vld [vmem:[#allocation7 + $0x38] sm:$0xff]   ;;  %v793_v5 = vld [vmem:[#allocation5 + $0x20] sm:$0xff]   ;;  %s631_s9 = sshll.u32 %s1133_s30, 4  ;;  %s657_s7 = sshll.u32 %s1018_s22, 8 }
  0x55   : > { %696 = vmatprep.subr.bf16.mxu1 %v961_v0  ;;  %712 = vmatprep.mubr.msk.bf16.mxu1 %vm962_vm0, %v961_v0  ;;  %v799_v6 = vld [vmem:[#allocation7 + $0x30] sm:$0xff]   ;;  %v794_v7 = vld [vmem:[#allocation5 + $0x18] sm:$0xff]   ;;  %v800_v8 = vld [vmem:[#allocation7 + $0x28] sm:$0xff]   ;;  %s271_s13 = scalar_lea.vmem [#allocation8], %s631_s9  ;;  %s1162_s17 = scalar_lea.hbm %s1210_s5, %s657_s7 }
  0x56   : > { %677 = vmatpush3.bf16.msra.mxu0 %v790_v1  ;;  %697 = vmatpush3.bf16.msra.mxu1 %v798_v4  ;;  %v795_v9 = vld [vmem:[#allocation5 + $0x10] sm:$0xff]   ;;  %v801_v10 = vld [vmem:[#allocation7 + $0x20] sm:$0xff]   ;;  %v796_v11 = vld [vmem:[#allocation5 + $0x8] sm:$0xff]   ;;  %s527_s14 = sshll.u32 %s271_s13, 4  ;;  %s514_s16 = scalar_lea.sflag [#allocation4], %s1133_s30  ;;  %s1157_s14 = int_to_ptr.vmem [resolvable:$true] %s527_s14 }
  0x57   : > { %678 = vmatprep.subr.bf16.mxu0 %v961_v0  ;;  %698 = vmatprep.subr.bf16.mxu1 %v961_v0  ;;  %v275_v12 = vld [vmem:[%s1137_s6] sm:$0xf]  ;;  %v276_v13 = vld [vmem:[%s1137_s6 + $0x4] sm:$0xf]  ;;  %v797_v18 = vld [vmem:[#allocation5] sm:$0xff]   ;;  %s886_s8 = scalar_lea.vmem %s1157_s14, 256 }
  0x58   : > { %v802_v14 = vld [vmem:[#allocation7 + $0x18] sm:$0xff]   ;;  %v277_v16 = vmax.bf16 %v963_v15, %v275_v12  ;;  %v278_v17 = vmax.bf16 %v963_v15, %v276_v13  ;;  %v803_v20 = vld [vmem:[#allocation7 + $0x10] sm:$0xff]   ;;  %v804_v21 = vld [vmem:[#allocation7 + $0x8] sm:$0xff]   ;;  %p887_p5 = scmp.ne.s32.totalorder %s1157_s14, %s886_s8  ;;  %p1227_p2 = scmp.ne.s32.totalorder %s1220_s23, 0 }
  0x59   : > { %v805_v22 = vld [vmem:[#allocation7] sm:$0xff]   ;;  %v632_v24 = vld [vmem:[%s1207_s2] ss:$0 sm:$0xff]  ;;  %s964_s22 = smov [#allocation8]  }
  0x5a   : > { %679 = vmatpush3.bf16.msra.mxu0 %v791_v2  ;;  %699 = vmatpush3.bf16.msra.mxu1 %v799_v6  ;;  %v633_v19 = vcombine.low %v277_v16, %v278_v17  ;;  %v642_v32 = vld [vmem:[%s1209_s4] ss:$0 sm:$0xff]  ;;  %p888_p7 = pnand %p887_p5, %p1227_p2  ;;  %s890_s29 = sshll.u32 %s964_s22, 4  ;;  %s891_s29 = int_to_ptr.vmem [resolvable:$false] %s890_s29 }
  0x5b   : > { %680 = vmatprep.subr.bf16.mxu0 %v961_v0  ;;  %700 = vmatprep.subr.bf16.mxu1 %v961_v0  ;;  %s892_s6 = scalar_lea.vmem %s891_s29, 512  ;;  %p893_p13 = scmp.lt.s32.totalorder %s1157_s14, %s891_s29 }
  0x5c   : > { %p889_p12 = pneg %p888_p7  ;;  %p894_p0 = scmp.lt.s32.totalorder %s892_s6, %s886_s8 }
  0x5e   : > { %681 = vmatpush3.bf16.msra.mxu0 %v792_v3  ;;  %701 = vmatpush3.bf16.msra.mxu1 %v800_v8  ;;  %p895_p10 = por %p894_p0, %p893_p13 }
  0x5f   : > { %682 = vmatprep.subr.bf16.mxu0 %v961_v0  ;;  %702 = vmatprep.subr.bf16.mxu1 %v961_v0 }
  0x60   : > { %p896_p3 = pnand %p895_p10, %p889_p12 }
  0x62   : > { %683 = vmatpush3.bf16.msra.mxu0 %v793_v5  ;;  %703 = vmatpush3.bf16.msra.mxu1 %v801_v10 }
  0x63   : > { %684 = vmatprep.subr.bf16.mxu0 %v961_v0  ;;  %704 = vmatprep.subr.bf16.mxu1 %v961_v0 }
  0x66   : > { %685 = vmatpush3.bf16.msra.mxu0 %v794_v7  ;;  %705 = vmatpush3.bf16.msra.mxu1 %v802_v14 }
  0x67   : > { %686 = vmatprep.subr.bf16.mxu0 %v961_v0  ;;  %706 = vmatprep.subr.bf16.mxu1 %v961_v0 }
  0x6a   : > { %687 = vmatpush3.bf16.msra.mxu0 %v795_v9  ;;  %707 = vmatpush3.bf16.msra.mxu1 %v803_v20 }
  0x6b   : > { %688 = vmatprep.subr.bf16.mxu0 %v961_v0  ;;  %708 = vmatprep.subr.bf16.mxu1 %v961_v0 }
  0x6e   : > { %689 = vmatpush3.bf16.msra.mxu0 %v796_v11  ;;  %709 = vmatpush3.bf16.msra.mxu1 %v804_v21 }
  0x6f   : > { %690 = vmatprep.subr.bf16.mxu0 %v961_v0  ;;  %710 = vmatprep.subr.bf16.mxu1 %v961_v0 }
  0x72   : > { %691 = vmatpush3.bf16.msra.mxu0 %v797_v18  ;;  %711 = vmatpush3.bf16.msra.mxu1 %v805_v22 }
  0x75   : > { %693 = vmatmul.mubr.bf16.vlgmr.msra.gmra.mxu0 %v633_v19 }
 0x135   : > { %v390_v23 = vpop.f32.mrf.mxu0 }
 0x136   : > { %v391_v27 = vadd.f32 %v632_v24, %v390_v23 }
 0x137   : > { %v694_v25 = vpop.f32.mrf.mxu0 }
 0x139   : > { %v393_v26 = vpop.f32.mrf.mxu0 }
 0x13a   : > { %v394_v28 = vadd.f32 %v632_v24, %v393_v26 }
 0x13b   : > { %v695_v29 = vpop.f32.mrf.mxu0 }
 0x13c   : > { %v397_v30 = vpack.c.bf16 %v394_v28, %v391_v27 }
 0x13e   : > { %v398_v31 = vmax.bf16 %v963_v15, %v397_v30 }
 0x140   : > { %713 = vmatmul.mubr.bf16.vlgmr.msra.gmra.mxu1 %v398_v31 }
 0x200   : > { %v504_v33 = vpop.f32.mrf.mxu1 }
 0x201   : > { %v505_v34 = vadd.f32 %v642_v32, %v504_v33 }
 0x202   : > { %v714_v35 = vpop.f32.mrf.mxu1 }
 0x203   : > { %511 = vst [vmem:[%s271_s13] sm:$0xff] %v505_v34 }
 0x204   : > { %v507_v36 = vpop.f32.mrf.mxu1 }
 0x205   : > { %v508_v37 = vadd.f32 %v642_v32, %v507_v36 }
 0x206   : > { %v715_v38 = vpop.f32.mrf.mxu1 }
 0x207   : > { %512 = vst [vmem:[%s271_s13 + $0x8] sm:$0xff] %v508_v37 }
 0x208   : > { %899 = shalt.err (!%p896_p3)
}
 0x209   : > { %s900_s24 = scalar_lea.hbm %s1162_s17, 256  ;;  %s904_s10 = scalar_lea.hbm %s1210_s5, 512 }
 0x20a   : > { %p901_p11 = scmp.ne.s32.totalorder %s1162_s17, %s900_s24  ;;  %p905_p4 = scmp.lt.s32.totalorder %s1162_s17, %s1210_s5 }
 0x20b   : > { %p906_p6 = scmp.lt.s32.totalorder %s904_s10, %s900_s24 }
 0x20c   : > { %p902_p9 = pnand %p901_p11, %p1227_p2 }
 0x20d   : > { %p907_p8 = por %p906_p6, %p905_p4 }
 0x20e   : > { %p903_p1 = pneg %p902_p9 }
 0x210   : > { %p908_p5 = pnand %p907_p8, %p903_p1 }
 0x212   : > { %911 = shalt.err (!%p908_p5)
}
 0x213   : > { %s965_s7 = smov 128   ;;  %s966_s28 = smov 8  }
 0x214   : > { %726 = dma.vmem_to_hbm [thread:$0]  (%p1227_p2), %s1157_s14, 256, %s1162_s17, %s514_s16, %s965_s7, %s965_s7, %s966_s28  }
 0x215 PF: > { %s542_s11 = sand.u32 1, %s942_s18   ;;  %p1228_p7 = scmp.ne.s32.totalorder %s1217_s25, 0 }
 0x216   : > { %p1229_p12 = scmp.ge.s32.totalorder %s954_s21, 2  ;;  %s543_s8 = scalar_lea.sflag [#allocation4], %s542_s11 }
 0x218   : > { %p740_p13 = pnand %p1229_p12, %p1228_p7 }
 0x21a   : > { %p741_p0 = pneg %p740_p13 }
 0x21c   : > { %937 = dma.done.wait (%p741_p0), %s543_s8, 256  }
 0x21d   : > { %939 = vsyncadd (%p741_p0), %s543_s8, 4294967040  ;;  %p19_p10 = scmp.ge.s32.totalorder %s1075_s15, 4   ;;  %s1230_s18 = smov %s946_s19 }
 0x21e   : > { %s1231_s19 = smov %s950_s20  ;;  %s1232_s20 = smov %s1091_s27 }
 0x21f   : > { %s1233_s21 = smov %s1075_s15  ;;  %21 = sbr.rel (!%p19_p10) target bundleno = 6 (0x6), region = 93 }
 0x224   :  { %548 = vsyncpa [#allocation3], 1 }
 0x225   :  { %550 = vsyncpa [#allocation3 + $0x1], 1 }
 0x226   :  { %551 = vsyncpa [#allocation6], 1 }
 0x227   :  { %552 = vsyncpa [#allocation4], 1 }
 0x228   :  { %554 = vsyncpa [#allocation4 + $0x1], 1 }

// kernel: tpu_custom_call.1
= control target key start
LH: loop header
LB: loop body
LE: loop exit
PB: predicated region body
PF: predicated region fallthrough
CT: control target
= control target key end

     0   :  { %10 = vsyncpa [#allocation3], 0  ;;  %s1205_s0 = inlined_call_operand.hbm [shape: bf16[32,128], index: 0, kind: input, shape index: {}]   ;;  %s1206_s1 = inlined_call_operand.hbm [shape: bf16[128,128], index: 1, kind: input, shape index: {}]   ;;  %s1207_s2 = inlined_call_operand.vmem [shape: f32[1,128], index: 2, kind: input, shape index: {}]   ;;  %s1208_s3 = inlined_call_operand.hbm [shape: bf16[128,128], index: 3, kind: input, shape index: {}]   ;;  %s1209_s4 = inlined_call_operand.vmem [shape: f32[1,128], index: 4, kind: input, shape index: {}]   ;;  %s1210_s5 = inlined_call_operand.hbm [shape: f32[32,128], index: 5, kind: output, shape index: {}]  }
   0x1   :  { %12 = vsyncpa [#allocation3 + $0x1], 0 }
   0x2   :  { %13 = vsyncpa [#allocation6], 0 }
   0x3   :  { %14 = vsyncpa [#allocation4], 0 }
   0x4   :  { %16 = vsyncpa [#allocation4 + $0x1], 0  ;;  %s997_s18 = smov 0   ;;  %s999_s19 = smov 0  }
   0x5   :  { %s1001_s20 = smov 0   ;;  %s1003_s21 = smov 0  }
   0x6 LB: > { %s1018_s22 = sadd.s32 4294967295, %s954_s21   ;;  %s619_s23 = sadd.s32 4294967294, %s954_s21   ;;  %s954_s21 = sphi %s1003_s21, %s1233_s21   ;;  %s950_s20 = sphi %s1001_s20, %s1232_s20   ;;  %s946_s19 = sphi %s999_s19, %s1231_s19   ;;  %s942_s18 = sphi %s997_s18, %s1230_s18  }
   0x7   : > { %p42_p0 = scmp.ne.s32.totalorder %s946_s19, %s942_s18  ;;  %p1211_p1 = scmp.eq.s32.totalorder %s1018_s22, 0 }
   0x8   : > { %p150_p2 = scmp.eq.s32.totalorder %s1018_s22, 1  ;;  %p156_p3 = scmp.eq.s32.totalorder %s619_s23, 1 }
   0x9   : > { %p1027_p4 = por %p1211_p1, %p42_p0  ;;  %p620_p5 = scmp.ge.s32.totalorder %s954_s21, 1 }
   0xa   : > { %p1032_p6 = por %p156_p3, %p42_p0  ;;  %p163_p7 = scmp.lt.s32.totalorder %s954_s21, 3 }
   0xb   : > { %s1216_s24 = scalar_select %p1027_p4, 1, 0 }
   0xc   : > { %s1217_s25 = scalar_select %p1032_p6, 1, 0 }
   0xd   : > { %p1037_p8 = pnand %p620_p5, %p163_p7  ;;  %s956_s27 = smov [#allocation5]  }
   0xe   : > { %s175_s28 = sshll.u32 %s956_s27, 4  ;;  %s957_s30 = smov [#allocation7]   ;;  %s176_s28 = int_to_ptr.vmem [resolvable:$true] %s175_s28 }
   0xf   : > { %s1218_s26 = scalar_select %p1037_p8, 1, 0 }
  0x10   : > { %p728_p9 = pneg %p1037_p8  ;;  %s191_s6 = sshll.u32 %s957_s30, 4  ;;  %s192_s6 = int_to_ptr.vmem [resolvable:$true] %s191_s6 }
  0x11   : > { %s817_s7 = scalar_lea.vmem %s176_s28, 1024  ;;  %p825_p5 = scmp.lt.s32.totalorder %s176_s28, %s176_s28 }
  0x12   : > { %p1046_p11 = pnand %p728_p9, %p1211_p1  ;;  %p818_p13 = scmp.ne.s32.totalorder %s176_s28, %s817_s7 }
  0x13   : > { %p826_p7 = scmp.lt.s32.totalorder %s817_s7, %s817_s7 }
  0x14   : > { %p808_p12 = pneg %p1046_p11 }
  0x15   : > { %p827_p10 = por %p826_p7, %p825_p5 }
  0x16   : > { %p820_p0 = pnand %p818_p13, %p808_p12 }
  0x18   : > { %p821_p3 = pneg %p820_p0 }
  0x1a   : > { %p828_p9 = pnand %p827_p10, %p821_p3 }
  0x1c   : > { %831 = shalt.err (!%p828_p9)
}
  0x1d   : > { %s1212_s8 = smov 64   ;;  %s959_s9 = smov 4  }
  0x1e   : > { %731 = dma.hbm_to_vmem [thread:$0]  (!%p1046_p11), %s1206_s1, 1024, %s176_s28, [#allocation6], %s1212_s8, %s1212_s8, %s959_s9  }
  0x1f   : > { %s843_s12 = scalar_lea.vmem %s192_s6, 1024  ;;  %p851_p10 = scmp.lt.s32.totalorder %s192_s6, %s192_s6 }
  0x20   : > { %p844_p13 = scmp.ne.s32.totalorder %s192_s6, %s843_s12  ;;  %p852_p3 = scmp.lt.s32.totalorder %s843_s12, %s843_s12 }
  0x22   : > { %p846_p0 = pnand %p844_p13, %p808_p12  ;;  %p853_p7 = por %p852_p3, %p851_p10 }
  0x24   : > { %p847_p5 = pneg %p846_p0 }
  0x26   : > { %p854_p9 = pnand %p853_p7, %p847_p5 }
  0x28   : > { %857 = shalt.err (!%p854_p9)
}
  0x29   : > { %734 = dma.hbm_to_vmem [thread:$0]  (!%p1046_p11), %s1208_s3, 1024, %s192_s6, [#allocation6], %s1212_s8, %s1212_s8, %s959_s9  }
  0x2a   : > { %s1075_s15 = sadd.s32 1, %s954_s21   ;;  %s29_s16 = sadd.s32 1, %s950_s20 }
  0x2b   : > { %s26_s17 = ssub.s32 %s954_s21, %s1075_s15  ;;  %p36_p12 = scmp.ne.s32.totalorder %s950_s20, %s946_s19 }
  0x2c   : > { %p27_p13 = scmp.eq.s32.totalorder %s26_s17, 0  ;;  %p37_p0 = scmp.eq.s32.totalorder %s954_s21, 0 }
  0x2d   : > { %p1085_p5 = por %p150_p2, %p36_p12  ;;  %p745_p10 = scmp.lt.s32.totalorder %s954_s21, 2 }
  0x2e   : > { %s1091_s27 = scalar_select %p27_p13, %s950_s20, %s29_s16  }
  0x2f   : > { %s1220_s23 = scalar_select %p1085_p5, 1, 0 }
  0x30   : > { %p38_p3 = por %p37_p0, %p36_p12  ;;  %s208_s28 = sand.u32 1, %s950_s20  }
  0x31   : > { %s624_s29 = sshll.u32 %s208_s28, 3  ;;  %s656_s30 = sshll.u32 %s954_s21, 7 }
  0x32   : > { %s1098_s10 = scalar_lea.hbm %s1205_s0, %s656_s30  ;;  %s212_s11 = scalar_lea.vmem [#allocation2], %s624_s29 }
  0x33   : > { %s219_s12 = sshll.u32 %s212_s11, 4  ;;  %p1102_p2 = pnand %p745_p10, %p38_p3  ;;  %s1100_s12 = int_to_ptr.vmem [resolvable:$true] %s219_s12 }
  0x34   : > { %s1106_s14 = scalar_lea.sflag [#allocation3], %s208_s28  ;;  %s858_s16 = scalar_lea.hbm %s1098_s10, 128 }
  0x35   : > { %p859_p11 = scmp.ne.s32.totalorder %s1098_s10, %s858_s16  ;;  %p860_p7 = pneg %p1102_p2 }
  0x36   : > { %s863_s29 = scalar_lea.hbm %s1205_s0, 256  ;;  %p864_p13 = scmp.lt.s32.totalorder %s1098_s10, %s1205_s0 }
  0x37   : > { %p861_p9 = pnand %p860_p7, %p859_p11  ;;  %p865_p0 = scmp.lt.s32.totalorder %s863_s29, %s858_s16 }
  0x39   : > { %p862_p12 = pneg %p861_p9  ;;  %p866_p10 = por %p865_p0, %p864_p13 }
  0x3b   : > { %p867_p3 = pnand %p866_p10, %p862_p12 }
  0x3d   : > { %870 = shalt.err (!%p867_p3)
}
  0x3e   : > { %s871_s28 = scalar_lea.vmem %s1100_s12, 128  ;;  %s960_s11 = smov [#allocation2]  }
  0x3f   : > { %p872_p1 = scmp.ne.s32.totalorder %s1100_s12, %s871_s28  ;;  %s876_s8 = sshll.u32 %s960_s11, 4  ;;  %s877_s8 = int_to_ptr.vmem [resolvable:$false] %s876_s8 }
  0x40   : > { %s878_s17 = scalar_lea.vmem %s877_s8, 256  ;;  %p879_p9 = scmp.lt.s32.totalorder %s1100_s12, %s877_s8 }
  0x41   : > { %p874_p6 = pnand %p872_p1, %p860_p7  ;;  %p880_p5 = scmp.lt.s32.totalorder %s878_s17, %s871_s28 }
  0x43   : > { %p875_p11 = pneg %p874_p6  ;;  %p881_p4 = por %p880_p5, %p879_p9 }
  0x45   : > { %p882_p8 = pnand %p881_p4, %p875_p11 }
  0x47   : > { %885 = shalt.err (!%p882_p8)
}
  0x48   : > { %s1222_s16 = smov 64   ;;  %p1223_p1 = scmp.ne.s32.totalorder %s1218_s26, 0 }
  0x49   : > { %738 = dma.hbm_to_vmem [thread:$0]  (!%p1102_p2), %s1098_s10, 128, %s1100_s12, %s1106_s14, %s1222_s16, %s1222_s16, %s959_s9  }
  0x4a   : > { %231 = sbr.rel (%p1223_p1) target bundleno = 533 (0x215), region = 40  ;;  %s1133_s30 = sand.u32 (!%p1223_p1), 1, %s946_s19  }
  0x4b   : > { %s628_s8 = sshll.u32 (!%p1223_p1), %s1133_s30, 3  ;;  %s234_s29 = scalar_lea.sflag (!%p1223_p1), [#allocation3], %s1133_s30 }
  0x4c   : > { %s1137_s6 = scalar_lea.vmem (!%p1223_p1), [#allocation2], %s628_s8  ;;  %p1224_p4 = scmp.ne.s32.totalorder (!%p1223_p1), %s1216_s24, 0 }
  0x4f   : > { %929 = dma.done.wait (%p1224_p4), %s234_s29, 128  }
  0x50   : > { %931 = vsyncadd (%p1224_p4), %s234_s29, 4294967168  ;;  %p1225_p6 = scmp.eq.s32.totalorder %s1018_s22, 0 }
  0x52   : > { %933 = dma.done.wait (%p1225_p6), [#allocation6], 2048   ;;  %p1226_p8 = pmov %p1225_p6 }
  0x53   : > { %v961_v0 = vmov 0.0   ;;  %vm962_vm0 = vmmov 0   ;;  %v790_v1 = vld [vmem:[#allocation5 + $0x38] sm:$0xff]   ;;  %v791_v2 = vld [vmem:[#allocation5 + $0x30] sm:$0xff]   ;;  %v792_v3 = vld [vmem:[#allocation5 + $0x28] sm:$0xff]   ;;  %v963_v15 = vmov 0  }
  0x54   : > { %935 = vsyncadd (%p1226_p8), [#allocation6], 4294965248  ;;  %676 = vmatprep.subr.bf16.mxu0 %v961_v0  ;;  %692 = vmatprep.mubr.msk.bf16.mxu0 %vm962_vm0, %v961_v0  ;;  %v798_v4 = vld [vmem:[#allocation7 + $0x38] sm:$0xff]   ;;  %v793_v5 = vld [vmem:[#allocation5 + $0x20] sm:$0xff]   ;;  %s631_s9 = sshll.u32 %s1133_s30, 4  ;;  %s657_s7 = sshll.u32 %s1018_s22, 8 }
  0x55   : > { %696 = vmatprep.subr.bf16.mxu1 %v961_v0  ;;  %712 = vmatprep.mubr.msk.bf16.mxu1 %vm962_vm0, %v961_v0  ;;  %v799_v6 = vld [vmem:[#allocation7 + $0x30] sm:$0xff]   ;;  %v794_v7 = vld [vmem:[#allocation5 + $0x18] sm:$0xff]   ;;  %v800_v8 = vld [vmem:[#allocation7 + $0x28] sm:$0xff]   ;;  %s271_s13 = scalar_lea.vmem [#allocation8], %s631_s9  ;;  %s1162_s17 = scalar_lea.hbm %s1210_s5, %s657_s7 }
  0x56   : > { %677 = vmatpush3.bf16.msra.mxu0 %v790_v1  ;;  %697 = vmatpush3.bf16.msra.mxu1 %v798_v4  ;;  %v795_v9 = vld [vmem:[#allocation5 + $0x10] sm:$0xff]   ;;  %v801_v10 = vld [vmem:[#allocation7 + $0x20] sm:$0xff]   ;;  %v796_v11 = vld [vmem:[#allocation5 + $0x8] sm:$0xff]   ;;  %s527_s14 = sshll.u32 %s271_s13, 4  ;;  %s514_s16 = scalar_lea.sflag [#allocation4], %s1133_s30  ;;  %s1157_s14 = int_to_ptr.vmem [resolvable:$true] %s527_s14 }
  0x57   : > { %678 = vmatprep.subr.bf16.mxu0 %v961_v0  ;;  %698 = vmatprep.subr.bf16.mxu1 %v961_v0  ;;  %v275_v12 = vld [vmem:[%s1137_s6] sm:$0xf]  ;;  %v276_v13 = vld [vmem:[%s1137_s6 + $0x4] sm:$0xf]  ;;  %v797_v18 = vld [vmem:[#allocation5] sm:$0xff]   ;;  %s886_s8 = scalar_lea.vmem %s1157_s14, 256 }
  0x58   : > { %v802_v14 = vld [vmem:[#allocation7 + $0x18] sm:$0xff]   ;;  %v277_v16 = vmax.bf16 %v963_v15, %v275_v12  ;;  %v278_v17 = vmax.bf16 %v963_v15, %v276_v13  ;;  %v803_v20 = vld [vmem:[#allocation7 + $0x10] sm:$0xff]   ;;  %v804_v21 = vld [vmem:[#allocation7 + $0x8] sm:$0xff]   ;;  %p887_p5 = scmp.ne.s32.totalorder %s1157_s14, %s886_s8  ;;  %p1227_p2 = scmp.ne.s32.totalorder %s1220_s23, 0 }
  0x59   : > { %v805_v22 = vld [vmem:[#allocation7] sm:$0xff]   ;;  %v632_v24 = vld [vmem:[%s1207_s2] ss:$0 sm:$0xff]  ;;  %s964_s22 = smov [#allocation8]  }
  0x5a   : > { %679 = vmatpush3.bf16.msra.mxu0 %v791_v2  ;;  %699 = vmatpush3.bf16.msra.mxu1 %v799_v6  ;;  %v633_v19 = vcombine.low %v277_v16, %v278_v17  ;;  %v642_v32 = vld [vmem:[%s1209_s4] ss:$0 sm:$0xff]  ;;  %p888_p7 = pnand %p887_p5, %p1227_p2  ;;  %s890_s29 = sshll.u32 %s964_s22, 4  ;;  %s891_s29 = int_to_ptr.vmem [resolvable:$false] %s890_s29 }
  0x5b   : > { %680 = vmatprep.subr.bf16.mxu0 %v961_v0  ;;  %700 = vmatprep.subr.bf16.mxu1 %v961_v0  ;;  %s892_s6 = scalar_lea.vmem %s891_s29, 512  ;;  %p893_p13 = scmp.lt.s32.totalorder %s1157_s14, %s891_s29 }
  0x5c   : > { %p889_p12 = pneg %p888_p7  ;;  %p894_p0 = scmp.lt.s32.totalorder %s892_s6, %s886_s8 }
  0x5e   : > { %681 = vmatpush3.bf16.msra.mxu0 %v792_v3  ;;  %701 = vmatpush3.bf16.msra.mxu1 %v800_v8  ;;  %p895_p10 = por %p894_p0, %p893_p13 }
  0x5f   : > { %682 = vmatprep.subr.bf16.mxu0 %v961_v0  ;;  %702 = vmatprep.subr.bf16.mxu1 %v961_v0 }
  0x60   : > { %p896_p3 = pnand %p895_p10, %p889_p12 }
  0x62   : > { %683 = vmatpush3.bf16.msra.mxu0 %v793_v5  ;;  %703 = vmatpush3.bf16.msra.mxu1 %v801_v10 }
  0x63   : > { %684 = vmatprep.subr.bf16.mxu0 %v961_v0  ;;  %704 = vmatprep.subr.bf16.mxu1 %v961_v0 }
  0x66   : > { %685 = vmatpush3.bf16.msra.mxu0 %v794_v7  ;;  %705 = vmatpush3.bf16.msra.mxu1 %v802_v14 }
  0x67   : > { %686 = vmatprep.subr.bf16.mxu0 %v961_v0  ;;  %706 = vmatprep.subr.bf16.mxu1 %v961_v0 }
  0x6a   : > { %687 = vmatpush3.bf16.msra.mxu0 %v795_v9  ;;  %707 = vmatpush3.bf16.msra.mxu1 %v803_v20 }
  0x6b   : > { %688 = vmatprep.subr.bf16.mxu0 %v961_v0  ;;  %708 = vmatprep.subr.bf16.mxu1 %v961_v0 }
  0x6e   : > { %689 = vmatpush3.bf16.msra.mxu0 %v796_v11  ;;  %709 = vmatpush3.bf16.msra.mxu1 %v804_v21 }
  0x6f   : > { %690 = vmatprep.subr.bf16.mxu0 %v961_v0  ;;  %710 = vmatprep.subr.bf16.mxu1 %v961_v0 }
  0x72   : > { %691 = vmatpush3.bf16.msra.mxu0 %v797_v18  ;;  %711 = vmatpush3.bf16.msra.mxu1 %v805_v22 }
  0x75   : > { %693 = vmatmul.mubr.bf16.vlgmr.msra.gmra.mxu0 %v633_v19 }
 0x135   : > { %v390_v23 = vpop.f32.mrf.mxu0 }
 0x136   : > { %v391_v27 = vadd.f32 %v632_v24, %v390_v23 }
 0x137   : > { %v694_v25 = vpop.f32.mrf.mxu0 }
 0x139   : > { %v393_v26 = vpop.f32.mrf.mxu0 }
 0x13a   : > { %v394_v28 = vadd.f32 %v632_v24, %v393_v26 }
 0x13b   : > { %v695_v29 = vpop.f32.mrf.mxu0 }
 0x13c   : > { %v397_v30 = vpack.c.bf16 %v394_v28, %v391_v27 }
 0x13e   : > { %v398_v31 = vmax.bf16 %v963_v15, %v397_v30 }
 0x140   : > { %713 = vmatmul.mubr.bf16.vlgmr.msra.gmra.mxu1 %v398_v31 }
 0x200   : > { %v504_v33 = vpop.f32.mrf.mxu1 }
 0x201   : > { %v505_v34 = vadd.f32 %v642_v32, %v504_v33 }
 0x202   : > { %v714_v35 = vpop.f32.mrf.mxu1 }
 0x203   : > { %511 = vst [vmem:[%s271_s13] sm:$0xff] %v505_v34 }
 0x204   : > { %v507_v36 = vpop.f32.mrf.mxu1 }
 0x205   : > { %v508_v37 = vadd.f32 %v642_v32, %v507_v36 }
 0x206   : > { %v715_v38 = vpop.f32.mrf.mxu1 }
 0x207   : > { %512 = vst [vmem:[%s271_s13 + $0x8] sm:$0xff] %v508_v37 }
 0x208   : > { %899 = shalt.err (!%p896_p3)
}
 0x209   : > { %s900_s24 = scalar_lea.hbm %s1162_s17, 256  ;;  %s904_s10 = scalar_lea.hbm %s1210_s5, 512 }
 0x20a   : > { %p901_p11 = scmp.ne.s32.totalorder %s1162_s17, %s900_s24  ;;  %p905_p4 = scmp.lt.s32.totalorder %s1162_s17, %s1210_s5 }
 0x20b   : > { %p906_p6 = scmp.lt.s32.totalorder %s904_s10, %s900_s24 }
 0x20c   : > { %p902_p9 = pnand %p901_p11, %p1227_p2 }
 0x20d   : > { %p907_p8 = por %p906_p6, %p905_p4 }
 0x20e   : > { %p903_p1 = pneg %p902_p9 }
 0x210   : > { %p908_p5 = pnand %p907_p8, %p903_p1 }
 0x212   : > { %911 = shalt.err (!%p908_p5)
}
 0x213   : > { %s965_s7 = smov 128   ;;  %s966_s28 = smov 8  }
 0x214   : > { %726 = dma.vmem_to_hbm [thread:$0]  (%p1227_p2), %s1157_s14, 256, %s1162_s17, %s514_s16, %s965_s7, %s965_s7, %s966_s28  }
 0x215 PF: > { %s542_s11 = sand.u32 1, %s942_s18   ;;  %p1228_p7 = scmp.ne.s32.totalorder %s1217_s25, 0 }
 0x216   : > { %p1229_p12 = scmp.ge.s32.totalorder %s954_s21, 2  ;;  %s543_s8 = scalar_lea.sflag [#allocation4], %s542_s11 }
 0x218   : > { %p740_p13 = pnand %p1229_p12, %p1228_p7 }
 0x21a   : > { %p741_p0 = pneg %p740_p13 }
 0x21c   : > { %937 = dma.done.wait (%p741_p0), %s543_s8, 256  }
 0x21d   : > { %939 = vsyncadd (%p741_p0), %s543_s8, 4294967040  ;;  %p19_p10 = scmp.ge.s32.totalorder %s1075_s15, 4   ;;  %s1230_s18 = smov %s946_s19 }
 0x21e   : > { %s1231_s19 = smov %s950_s20  ;;  %s1232_s20 = smov %s1091_s27 }
 0x21f   : > { %s1233_s21 = smov %s1075_s15  ;;  %21 = sbr.rel (!%p19_p10) target bundleno = 6 (0x6), region = 93 }
 0x224   :  { %548 = vsyncpa [#allocation3], 1 }
 0x225   :  { %550 = vsyncpa [#allocation3 + $0x1], 1 }
 0x226   :  { %551 = vsyncpa [#allocation6], 1 }
 0x227   :  { %552 = vsyncpa [#allocation4], 1 }
 0x228   :  { %554 = vsyncpa [#allocation4 + $0x1], 1 }

// kernel: tpu_custom_call.1
= control target key start
LH: loop header
LB: loop body
LE: loop exit
PB: predicated region body
PF: predicated region fallthrough
CT: control target
= control target key end

     0   :  { %8 = vsyncpa [#allocation4], 0  ;;  %s1057_s0 = inlined_call_operand.hbm [shape: bf16[32,128], index: 0, kind: input, shape index: {}]   ;;  %s1058_s1 = inlined_call_operand.hbm [shape: bf16[128,128], index: 1, kind: input, shape index: {}]   ;;  %s1059_s2 = inlined_call_operand.vmem [shape: f32[1,128], index: 2, kind: input, shape index: {}]   ;;  %s1060_s3 = inlined_call_operand.hbm [shape: bf16[32,128], index: 3, kind: output, shape index: {}]  }
   0x1   :  { %10 = vsyncpa [#allocation4 + $0x1], 0 }
   0x2   :  { %11 = vsyncpa [#allocation7], 0 }
   0x3   :  { %12 = vsyncpa [#allocation5], 0 }
   0x4   :  { %14 = vsyncpa [#allocation5 + $0x1], 0  ;;  %s863_s12 = smov 0   ;;  %s865_s13 = smov 0  }
   0x5   :  { %s867_s14 = smov 0   ;;  %s869_s15 = smov 0  }
   0x6   :  { %s871_s16 = smov 0   ;;  %s873_s17 = smov 0  }
   0x7 LB: > { %s537_s18 = sadd.s32 4294967295, %s831_s17   ;;  %s538_s19 = sadd.s32 4294967294, %s831_s17   ;;  %s831_s17 = sphi %s873_s17, %s20_s17   ;;  %s827_s16 = sphi %s871_s16, %s1082_s16   ;;  %s823_s15 = sphi %s869_s15, %s1081_s15   ;;  %s819_s14 = sphi %s867_s14, %s1080_s14   ;;  %s815_s13 = sphi %s865_s13, %s1079_s13   ;;  %s811_s12 = sphi %s863_s12, %s1078_s12  }
   0x8   : > { %p61_p0 = scmp.ne.s32.totalorder %s815_s13, %s811_s12  ;;  %p897_p1 = scmp.eq.s32.totalorder %s537_s18, 0 }
   0x9   : > { %p901_p2 = scmp.eq.s32.totalorder %s537_s18, 1  ;;  %p147_p3 = scmp.eq.s32.totalorder %s538_s19, 1 }
   0xa   : > { %p907_p4 = por %p897_p1, %p61_p0  ;;  %p539_p5 = scmp.ge.s32.totalorder %s831_s17, 1 }
   0xb   : > { %p912_p6 = por %p147_p3, %p61_p0  ;;  %p154_p7 = scmp.lt.s32.totalorder %s831_s17, 3 }
   0xc   : > { %s1066_s22 = scalar_select %p907_p4, 1, 0 }
   0xd   : > { %s1067_s23 = scalar_select %p912_p6, 1, 0 }
   0xe   : > { %p917_p8 = pnand %p539_p5, %p154_p7  ;;  %s833_s25 = smov [#allocation6]  }
   0xf   : > { %s170_s26 = sshll.u32 %s833_s25, 4  ;;  %s39_s28 = sadd.s32 1, %s827_s16  ;;  %s171_s26 = int_to_ptr.vmem [resolvable:$true] %s170_s26 }
  0x10   : > { %p613_p9 = pneg %p917_p8  ;;  %s704_s29 = scalar_lea.vmem %s171_s26, 1024 }
  0x11   : > { %p705_p13 = scmp.ne.s32.totalorder %s171_s26, %s704_s29  ;;  %p712_p5 = scmp.lt.s32.totalorder %s171_s26, %s171_s26 }
  0x12   : > { %p926_p11 = pnand %p613_p9, %p897_p1  ;;  %p713_p7 = scmp.lt.s32.totalorder %s704_s29, %s704_s29 }
  0x14   : > { %p695_p12 = pneg %p926_p11  ;;  %p714_p6 = por %p713_p7, %p712_p5 }
  0x16   : > { %p707_p0 = pnand %p705_p13, %p695_p12 }
  0x18   : > { %p708_p3 = pneg %p707_p0 }
  0x1a   : > { %p715_p4 = pnand %p714_p6, %p708_p3 }
  0x1c   : > { %718 = shalt.err (!%p715_p4)
}
  0x1d   : > { %s1062_s30 = smov 64   ;;  %s1063_s4 = smov 4  }
  0x1e   : > { %616 = dma.hbm_to_vmem [thread:$0]  (!%p926_p11), %s1058_s1, 1024, %s171_s26, [#allocation7], %s1062_s30, %s1062_s30, %s1063_s4  }
  0x1f   : > { %p41_p4 = scmp.ge.s32.totalorder %s39_s28, 2  ;;  %s48_s7 = sadd.s32 1, %s819_s14 }
  0x20   : > { %p55_p6 = scmp.ne.s32.totalorder %s819_s14, %s815_s13  ;;  %p56_p9 = scmp.eq.s32.totalorder %s831_s17, 0 }
  0x21   : > { %s1084_s28 = smov (%p41_p4, %s39_s28), 0  ;;  %p626_p0 = scmp.lt.s32.totalorder %s831_s17, 2 }
  0x22   : > { %p947_p12 = por %p56_p9, %p55_p6  ;;  %p953_p13 = por %p901_p2, %p55_p6 }
  0x23   : > { %s43_s10 = ssub.s32 %s827_s16, %s1084_s28  ;;  %s190_s11 = sand.u32 1, %s819_s14  }
  0x24   : > { %p46_p11 = scmp.eq.s32.totalorder %s43_s10, 0  ;;  %s543_s18 = sshll.u32 %s190_s11, 3 }
  0x25   : > { %s567_s25 = sshll.u32 %s827_s16, 7  ;;  %s194_s5 = scalar_lea.vmem [#allocation3], %s543_s18 }
  0x26   : > { %s962_s19 = scalar_select %p46_p11, %s819_s14, %s48_s7  }
  0x27   : > { %s201_s29 = scalar_lea.hbm %s1057_s0, %s567_s25  ;;  %s202_s6 = sshll.u32 %s194_s5, 4  ;;  %s203_s6 = int_to_ptr.vmem [resolvable:$true] %s202_s6 }
  0x28   : > { %p970_p2 = pnand %p626_p0, %p947_p12  ;;  %s191_s30 = scalar_lea.sflag [#allocation4], %s190_s11 }
  0x29   : > { %s732_s10 = scalar_lea.vmem %s203_s6, 128  ;;  %s836_s7 = smov [#allocation3]  }
  0x2a   : > { %p721_p3 = pneg %p970_p2  ;;  %p733_p5 = scmp.ne.s32.totalorder %s203_s6, %s732_s10 }
  0x2b   : > { %s737_s4 = sshll.u32 %s836_s7, 4  ;;  %s738_s4 = int_to_ptr.vmem [resolvable:$false] %s737_s4 }
  0x2c   : > { %p735_p7 = pnand %p733_p5, %p721_p3  ;;  %s739_s25 = scalar_lea.vmem %s738_s4, 256 }
  0x2d   : > { %p740_p6 = scmp.lt.s32.totalorder %s203_s6, %s738_s4  ;;  %p741_p9 = scmp.lt.s32.totalorder %s739_s25, %s732_s10 }
  0x2e   : > { %p736_p4 = pneg %p735_p7 }
  0x2f   : > { %p742_p11 = por %p741_p9, %p740_p6 }
  0x31   : > { %p743_p10 = pnand %p742_p11, %p736_p4 }
  0x33   : > { %746 = shalt.err (!%p743_p10)
}
  0x34   : > { %s1073_s8 = smov 4   ;;  %s1074_s18 = smov 64  }
  0x35   : > { %620 = dma.hbm_to_vmem [thread:$0]  (!%p970_p2), %s201_s29, 128, %s203_s6, %s191_s30, %s1074_s18, %s1074_s18, %s1073_s8  }
  0x36   : > { %214 = sbr.rel (%p917_p8) target bundleno = 310 (0x136), region = 32  ;;  %s984_s11 = sand.u32 (!%p917_p8), 1, %s815_s13  }
  0x37   : > { %s547_s4 = sshll.u32 (!%p917_p8), %s984_s11, 3  ;;  %s217_s26 = scalar_lea.sflag (!%p917_p8), [#allocation4], %s984_s11 }
  0x38   : > { %s220_s27 = scalar_lea.vmem (!%p917_p8), [#allocation3], %s547_s4  ;;  %p1075_p10 = scmp.ne.s32.totalorder (!%p917_p8), %s1066_s22, 0 }
  0x3b   : > { %798 = dma.done.wait (%p1075_p10), %s217_s26, 128  }
  0x3c   : > { %800 = vsyncadd (%p1075_p10), %s217_s26, 4294967168 }
  0x3d   : > { %802 = dma.done.wait (%p897_p1), [#allocation7], 1024  }
  0x3e   : > { %804 = vsyncadd (%p897_p1), [#allocation7], 4294966272  ;;  %v837_v0 = vmov 0.0   ;;  %vm838_vm0 = vmmov 0   ;;  %v685_v1 = vld [vmem:[#allocation6 + $0x38] sm:$0xff]   ;;  %v686_v2 = vld [vmem:[#allocation6 + $0x30] sm:$0xff]  }
  0x3f   : > { %585 = vmatprep.subr.bf16.mxu0 %v837_v0  ;;  %601 = vmatprep.mubr.msk.bf16.mxu0 %vm838_vm0, %v837_v0  ;;  %v687_v3 = vld [vmem:[#allocation6 + $0x28] sm:$0xff]   ;;  %v688_v4 = vld [vmem:[#allocation6 + $0x20] sm:$0xff]   ;;  %v689_v5 = vld [vmem:[#allocation6 + $0x18] sm:$0xff]   ;;  %v839_v10 = vmov 0   ;;  %s249_s24 = scalar_lea.vmem [#allocation8], %s547_s4  ;;  %s570_s29 = sshll.u32 %s823_s15, 7 }
  0x40   : > { %586 = vmatpush3.bf16.msra.mxu0 %v685_v1  ;;  %v690_v6 = vld [vmem:[#allocation6 + $0x10] sm:$0xff]   ;;  %v691_v7 = vld [vmem:[#allocation6 + $0x8] sm:$0xff]   ;;  %v692_v13 = vld [vmem:[#allocation6] sm:$0xff]   ;;  %s423_s30 = sshll.u32 %s249_s24, 4  ;;  %s1009_s21 = scalar_lea.hbm %s1060_s3, %s570_s29  ;;  %s1004_s30 = int_to_ptr.vmem [resolvable:$true] %s423_s30 }
  0x41   : > { %587 = vmatprep.subr.bf16.mxu0 %v837_v0  ;;  %v263_v8 = vld [vmem:[%s220_s27] sm:$0xf]  ;;  %v264_v9 = vld [vmem:[%s220_s27 + $0x4] sm:$0xf]  ;;  %s409_s10 = scalar_lea.sflag [#allocation5], %s984_s11  ;;  %s747_s7 = scalar_lea.vmem %s1004_s30, 128 }
  0x42   : > { %v265_v11 = vmax.bf16 %v839_v10, %v263_v8  ;;  %v266_v12 = vmax.bf16 %v839_v10, %v264_v9  ;;  %v559_v16 = vld [vmem:[%s1059_s2] ss:$0 sm:$0xff]  ;;  %p748_p1 = scmp.ne.s32.totalorder %s1004_s30, %s747_s7  ;;  %s840_s15 = smov [#allocation8]  }
  0x43   : > { %s751_s25 = sshll.u32 %s840_s15, 4  ;;  %s752_s25 = int_to_ptr.vmem [resolvable:$false] %s751_s25 }
  0x44   : > { %588 = vmatpush3.bf16.msra.mxu0 %v686_v2  ;;  %v550_v14 = vcombine.low %v265_v11, %v266_v12  ;;  %p749_p8 = pnand %p748_p1, %p953_p13  ;;  %s753_s8 = scalar_lea.vmem %s752_s25, 256 }
  0x45   : > { %589 = vmatprep.subr.bf16.mxu0 %v837_v0  ;;  %p754_p0 = scmp.lt.s32.totalorder %s1004_s30, %s752_s25  ;;  %p755_p2 = scmp.lt.s32.totalorder %s753_s8, %s747_s7 }
  0x46   : > { %p750_p12 = pneg %p749_p8 }
  0x47   : > { %p756_p3 = por %p755_p2, %p754_p0 }
  0x48   : > { %590 = vmatpush3.bf16.msra.mxu0 %v687_v3 }
  0x49   : > { %591 = vmatprep.subr.bf16.mxu0 %v837_v0  ;;  %p757_p5 = pnand %p756_p3, %p750_p12 }
  0x4c   : > { %592 = vmatpush3.bf16.msra.mxu0 %v688_v4 }
  0x4d   : > { %593 = vmatprep.subr.bf16.mxu0 %v837_v0 }
  0x50   : > { %594 = vmatpush3.bf16.msra.mxu0 %v689_v5 }
  0x51   : > { %595 = vmatprep.subr.bf16.mxu0 %v837_v0 }
  0x54   : > { %596 = vmatpush3.bf16.msra.mxu0 %v690_v6 }
  0x55   : > { %597 = vmatprep.subr.bf16.mxu0 %v837_v0 }
  0x58   : > { %598 = vmatpush3.bf16.msra.mxu0 %v691_v7 }
  0x59   : > { %599 = vmatprep.subr.bf16.mxu0 %v837_v0 }
  0x5c   : > { %600 = vmatpush3.bf16.msra.mxu0 %v692_v13 }
  0x5f   : > { %602 = vmatmul.mubr.bf16.vlgmr.msra.gmra.mxu0 %v550_v14 }
 0x11f   : > { %v373_v15 = vpop.f32.mrf.mxu0 }
 0x120   : > { %v396_v19 = vadd.f32 %v559_v16, %v373_v15 }
 0x121   : > { %v603_v17 = vpop.f32.mrf.mxu0 }
 0x123   : > { %v376_v18 = vpop.f32.mrf.mxu0 }
 0x124   : > { %v397_v20 = vadd.f32 %v559_v16, %v376_v18 }
 0x125   : > { %v604_v21 = vpop.f32.mrf.mxu0 }
 0x126   : > { %v574_v22 = vpack.c.bf16 %v397_v20, %v396_v19 }
 0x128   : > { %575 = vst [vmem:[%s249_s24] sm:$0xff] %v574_v22  }
 0x129   : > { %760 = shalt.err (!%p757_p5)
}
 0x12a   : > { %s761_s18 = scalar_lea.hbm %s1009_s21, 128  ;;  %s765_s27 = scalar_lea.hbm %s1060_s3, 256 }
 0x12b   : > { %p762_p7 = scmp.ne.s32.totalorder %s1009_s21, %s761_s18  ;;  %p766_p9 = scmp.lt.s32.totalorder %s1009_s21, %s1060_s3 }
 0x12c   : > { %p767_p11 = scmp.lt.s32.totalorder %s765_s27, %s761_s18 }
 0x12d   : > { %p763_p4 = pnand %p762_p7, %p953_p13 }
 0x12e   : > { %p768_p10 = por %p767_p11, %p766_p9 }
 0x12f   : > { %p764_p6 = pneg %p763_p4 }
 0x131   : > { %p769_p1 = pnand %p768_p10, %p764_p6 }
 0x133   : > { %772 = shalt.err (!%p769_p1)
}
 0x134   : > { %s841_s24 = smov 64   ;;  %s842_s29 = smov 4  }
 0x135   : > { %611 = dma.vmem_to_hbm [thread:$0]  (%p953_p13), %s1004_s30, 128, %s1009_s21, %s409_s10, %s841_s24, %s841_s24, %s842_s29  }
 0x136 PF: > { %s438_s5 = sand.u32 1, %s811_s12   ;;  %p1076_p8 = scmp.ne.s32.totalorder %s1067_s23, 0 }
 0x137   : > { %p1077_p12 = scmp.ge.s32.totalorder %s831_s17, 2  ;;  %s439_s6 = scalar_lea.sflag [#allocation5], %s438_s5 }
 0x139   : > { %p622_p0 = pnand %p1077_p12, %p1076_p8 }
 0x13b   : > { %p623_p2 = pneg %p622_p0 }
 0x13d   : > { %806 = dma.done.wait (%p623_p2), %s439_s6, 128  }
 0x13e   : > { %808 = vsyncadd (%p623_p2), %s439_s6, 4294967168  ;;  %s20_s17 = sadd.s32 1, %s831_s17   ;;  %s1078_s12 = smov %s815_s13 }
 0x13f   : > { %p17_p3 = scmp.ge.s32.totalorder %s20_s17, 4   ;;  %s1079_s13 = smov %s819_s14 }
 0x140   : > { %s1080_s14 = smov %s962_s19  ;;  %s1081_s15 = smov %s827_s16 }
 0x141   : > { %s1082_s16 = smov %s1084_s28  ;;  %19 = sbr.rel (!%p17_p3) target bundleno = 7 (0x7), region = 93 }
 0x146   :  { %444 = vsyncpa [#allocation4], 1 }
 0x147   :  { %446 = vsyncpa [#allocation4 + $0x1], 1 }
 0x148   :  { %447 = vsyncpa [#allocation7], 1 }
 0x149   :  { %448 = vsyncpa [#allocation5], 1 }
 0x14a   :  { %450 = vsyncpa [#allocation5 + $0x1], 1 }

</bundles_post_ra>
